<compile_context>
chip_gen: v7x
topology: tpu7x:2x2x1
jax: 0.10.0
libtpu: 0.0.40
codegen_flags: <defaults>
</compile_context>

<pallas_src>
import functools
import math

import jax
import jax.numpy as jnp
from jax import lax
from jax.experimental import pallas as pl
from jax.experimental.pallas import tpu as pltpu


_MASK_VALUE = -1e30  # large negative for masked attention scores; exp() underflows to 0


# ----------------------------- small helpers -----------------------------

def _full_spec(shape):
    """BlockSpec that keeps the whole (small) array resident, independent of the grid."""
    nd = len(shape)
    return pl.BlockSpec(shape, lambda *_: (0,) * nd)


def _vmem_limit(nbytes):
    """Explicit scoped-VMEM budget: actual footprint + headroom (deterministic fit)."""
    return int(max(32 * 2**20, nbytes + 8 * 2**20))


def _layernorm(x, w, b, eps):
    # all non-matmul math in f32
    mu = jnp.mean(x, axis=-1, keepdims=True)
    var = jnp.mean((x - mu) ** 2, axis=-1, keepdims=True)
    return (x - mu) * lax.rsqrt(var + eps) * w + b


def _gelu_new(x):
    # transformers ACT2FN["gelu_new"] (GPT-2 default activation), f32
    return 0.5 * x * (1.0 + jnp.tanh(math.sqrt(2.0 / math.pi) * (x + 0.044715 * x ** 3)))


# ------------------------- Conv1D (the spec module) -------------------------
# PyTorch Conv1D.forward: x.view(-1, nx) @ W(nx, nf) + b, reshaped back.

def _conv1d_kernel(x_ref, w_ref, b_ref, o_ref):
    acc = jnp.dot(x_ref[...].astype(jnp.bfloat16), w_ref[...],
                  preferred_element_type=jnp.float32)
    o_ref[...] = (acc + b_ref[0]).astype(o_ref.dtype)


def conv1d(x, w, b, *, row_tile=128):
    nx, nf = w.shape
    lead = x.shape[:-1]
    M = int(math.prod(lead)) if lead else 1
    xm = x.reshape(M, nx)

    tm = min(row_tile, M)
    pad = (-M) % tm
    if pad:
        xm = jnp.pad(xm, ((0, pad), (0, 0)))
    Mp = M + pad

    w_bf16 = w.astype(jnp.bfloat16)
    b2 = b.reshape(1, nf).astype(jnp.float32)

    vmem = _vmem_limit(w_bf16.size * 2 + 4 * tm * (nx + nf) * 4 + nf * 4)
    out = pl.pallas_call(
        _conv1d_kernel,
        out_shape=jax.ShapeDtypeStruct((Mp, nf), x.dtype),
        grid_spec=pltpu.PrefetchScalarGridSpec(
            num_scalar_prefetch=0,
            grid=(Mp // tm,),
            in_specs=[
                pl.BlockSpec((tm, nx), lambda i: (i, 0)),
                _full_spec((nx, nf)),
                _full_spec((1, nf)),
            ],
            out_specs=pl.BlockSpec((tm, nf), lambda i: (i, 0)),
        ),
        compiler_params=pltpu.CompilerParams(
            dimension_semantics=("parallel",),      # row tiles shard across both v7x TCs
            vmem_limit_bytes=vmem),
    )(xm, w_bf16, b2)
    return out[:M].reshape(lead + (nf,))


# --------------------- encoder block, stage 1: LN1 + QKV Conv1D ---------------------

def _qkv_kernel(x_ref, ln1w_ref, ln1b_ref, wqkv_ref, bqkv_ref, qkv_ref, *, eps):
    x = x_ref[0].astype(jnp.float32)                       # (tq, E)
    h = _layernorm(x, ln1w_ref[0], ln1b_ref[0], eps)
    qkv = jnp.dot(h.astype(jnp.bfloat16), wqkv_ref[...],   # bf16 x bf16 -> f32 acc
                  preferred_element_type=jnp.float32) + bqkv_ref[0]
    qkv_ref[0] = qkv.astype(qkv_ref.dtype)                 # stored bf16


# ---- encoder block, stage 2: flash attention + out-proj + residual + LN2 + MLP ----

def _block_kernel(x_ref, q_ref, k_ref, v_ref,
                  wattn_ref, battn_ref, ln2w_ref, ln2b_ref,
                  wfc_ref, bfc_ref, wproj_ref, bproj_ref,
                  o_ref, *, tq, tk, num_heads, head_dim, eps):
    qi = pl.program_id(1)

    x = x_ref[0].astype(jnp.float32)      # (tq, E) residual input
    q = q_ref[0]                          # (H, tq, hd) bf16
    scale = 1.0 / math.sqrt(head_dim)

    # causal mask is only needed on the single diagonal KV block
    row = lax.broadcasted_iota(jnp.int32, (tq, tk), 0)
    col = lax.broadcasted_iota(jnp.int32, (tq, tk), 1)
    diag_keep = col <= row

    def kv_step(j, carry):
        m, l, acc = carry
        start = pl.multiple_of(j * tk, tk)
        k = k_ref[0, :, pl.ds(start, tk), :]      # (H, tk, hd) bf16
        v = v_ref[0, :, pl.ds(start, tk), :]
        s = jnp.einsum('htd,hsd->hts', q, k,
                       preferred_element_type=jnp.float32) * scale    # (H, tq, tk) f32
        keep = jnp.logical_or(j < qi, diag_keep)  # off-diagonal blocks fully visible
        s = jnp.where(keep[None, :, :], s, _MASK_VALUE)
        m_new = jnp.maximum(m, jnp.max(s, axis=-1, keepdims=True))
        alpha = jnp.exp(m - m_new)
        p = jnp.exp(s - m_new)
        l_new = alpha * l + jnp.sum(p, axis=-1, keepdims=True)
        acc_new = alpha * acc + jnp.einsum('hts,hsd->htd', p.astype(jnp.bfloat16), v,
                                           preferred_element_type=jnp.float32)
        return m_new, l_new, acc_new

    m0 = jnp.full((num_heads, tq, 1), _MASK_VALUE, jnp.float32)
    l0 = jnp.zeros((num_heads, tq, 1), jnp.float32)
    a0 = jnp.zeros((num_heads, tq, head_dim), jnp.float32)
    # only KV tiles j <= qi contribute (fully-masked upper-triangular blocks skipped)
    m, l, acc = lax.fori_loop(0, qi + 1, kv_step, (m0, l0, a0))

    attn = acc * pl.reciprocal(l, approx=True)    # (H, tq, hd); EUP vrcp

    # merge_heads + Conv1D out-projection without concatenate/reshape:
    #   out[t, e] = sum_h sum_d attn[h, t, d] * W_attn[h*hd + d, e]
    # wattn_ref was pre-reshaped to (H, hd, E) in the wrapper.
    a = jnp.einsum('htd,hde->hte', attn.astype(jnp.bfloat16), wattn_ref[...],
                   preferred_element_type=jnp.float32)
    a = jnp.sum(a, axis=0) + battn_ref[0]         # (tq, E)

    hs = x + a                                    # first residual

    h2 = _layernorm(hs, ln2w_ref[0], ln2b_ref[0], eps)
    h2 = jnp.dot(h2.astype(jnp.bfloat16), wfc_ref[...],
                 preferred_element_type=jnp.float32) + bfc_ref[0]
    h2 = _gelu_new(h2)                            # f32 elementwise
    h2 = jnp.dot(h2.astype(jnp.bfloat16), wproj_ref[...],
                 preferred_element_type=jnp.float32) + bproj_ref[0]

    # dropout layers are identity in eval mode
    o_ref[0] = (hs + h2).astype(o_ref.dtype)


def encoder_block(x, params, *, num_heads, eps=1e-5, q_tile=128):
    B, T, E = x.shape
    assert E % num_heads == 0
    hd = E // num_heads
    I = params["w_fc"].shape[1]

    tq = min(q_tile, T)
    assert T % tq == 0, "sequence length must be divisible by the query tile"
    nq = T // tq

    bf16 = jnp.bfloat16
    wqkv = params["w_qkv"].astype(bf16)
    wattn_h = params["w_attn_proj"].astype(bf16).reshape(num_heads, hd, E)
    wfc = params["w_fc"].astype(bf16)
    wproj = params["w_proj"].astype(bf16)

    # ---- stage 1: LN1 + fused QKV projection, tiled over (batch, query tile) ----
    vmem_a = _vmem_limit(wqkv.size * 2 + 4 * tq * E * 4 + 4 * tq * 3 * E * 2)
    qkv = pl.pallas_call(
        functools.partial(_qkv_kernel, eps=eps),
        out_shape=jax.ShapeDtypeStruct((B, T, 3 * E), bf16),
        grid_spec=pltpu.PrefetchScalarGridSpec(
            num_scalar_prefetch=0,
            grid=(B, nq),
            in_specs=[
                pl.BlockSpec((1, tq, E), lambda b, i: (b, i, 0)),
                _full_spec((1, E)), _full_spec((1, E)),
                _full_spec((E, 3 * E)), _full_spec((1, 3 * E)),
            ],
            out_specs=pl.BlockSpec((1, tq, 3 * E), lambda b, i: (b, i, 0)),
        ),
        compiler_params=pltpu.CompilerParams(
            dimension_semantics=("parallel", "parallel"),
            vmem_limit_bytes=vmem_a),
    )(x, params["ln1_w"], params["ln1_b"], wqkv, params["b_qkv"])

    # Head split is pure layout plumbing: do it in XLA outside the kernel so the kernel
    # sees lane-dense (H, T, hd) slabs and never concatenates or reshapes heads.
    q, k, v = jnp.split(qkv, 3, axis=-1)

    def split_heads(t):
        return t.reshape(B, T, num_heads, hd).transpose(0, 2, 1, 3)   # (B, H, T, hd)

    q, k, v = split_heads(q), split_heads(k), split_heads(v)

    # ---- stage 2: flash attention + out-proj + residual + LN2 + MLP + residual ----
    vmem_b = _vmem_limit(
        wattn_h.size * 2 + wfc.size * 2 + wproj.size * 2
        + 2 * (2 * num_heads * T * hd * 2)           # K and V slabs (double-buffered)
        + 4 * tq * E * 4                             # x / out tiles (double-buffered)
        + num_heads * tq * (tq + hd) * 4             # scores + flash accumulator
        + tq * I * 4)                                # MLP intermediate
    out = pl.pallas_call(
        functools.partial(_block_kernel, tq=tq, tk=tq,
                          num_heads=num_heads, head_dim=hd, eps=eps),
        out_shape=jax.ShapeDtypeStruct((B, T, E), x.dtype),
        grid_spec=pltpu.PrefetchScalarGridSpec(
            num_scalar_prefetch=0,
            grid=(B, nq),
            in_specs=[
                pl.BlockSpec((1, tq, E), lambda b, i: (b, i, 0)),                 # x
                pl.BlockSpec((1, num_heads, tq, hd), lambda b, i: (b, 0, i, 0)),  # q tile
                pl.BlockSpec((1, num_heads, T, hd), lambda b, i: (b, 0, 0, 0)),   # k full
                pl.BlockSpec((1, num_heads, T, hd), lambda b, i: (b, 0, 0, 0)),   # v full
                _full_spec((num_heads, hd, E)), _full_spec((1, E)),               # out proj
                _full_spec((1, E)), _full_spec((1, E)),                           # ln2
                _full_spec((E, I)), _full_spec((1, I)),                           # c_fc
                _full_spec((I, E)), _full_spec((1, E)),                           # c_proj
            ],
            out_specs=pl.BlockSpec((1, tq, E), lambda b, i: (b, i, 0)),
        ),
        compiler_params=pltpu.CompilerParams(
            dimension_semantics=("parallel", "parallel"),
            vmem_limit_bytes=vmem_b),
    )(x, q, k, v,
      wattn_h, params["b_attn_proj"], params["ln2_w"], params["ln2_b"],
      wfc, params["b_fc"], wproj, params["b_proj"])
    return out


# ------------------------- pure-JAX reference (check) -------------------------

def encoder_block_ref(x, params, *, num_heads, eps=1e-5):
    B, T, E = x.shape
    hd = E // num_heads

    def ln(v, w, b):
        mu = jnp.mean(v, -1, keepdims=True)
        var = jnp.mean((v - mu) ** 2, -1, keepdims=True)
        return (v - mu) / jnp.sqrt(var + eps) * w[0] + b[0]

    h = ln(x, params["ln1_w"], params["ln1_b"])
    qkv = h @ params["w_qkv"] + params["b_qkv"][0]
    q, k, v = jnp.split(qkv, 3, axis=-1)

    def split(t):  # (B,T,E) -> (B,H,T,hd)
        return t.reshape(B, T, num_heads, hd).transpose(0, 2, 1, 3)

    q, k, v = split(q), split(k), split(v)
    s = (q @ k.transpose(0, 1, 3, 2)) / math.sqrt(hd)
    causal = jnp.tril(jnp.ones((T, T), bool))
    s = jnp.where(causal, s, jnp.finfo(s.dtype).min)
    p = jax.nn.softmax(s, axis=-1)
    a = (p @ v).transpose(0, 2, 1, 3).reshape(B, T, E)
    a = a @ params["w_attn_proj"] + params["b_attn_proj"][0]
    hs = x + a
    h2 = ln(hs, params["ln2_w"], params["ln2_b"])
    h2 = h2 @ params["w_fc"] + params["b_fc"][0]
    h2 = _gelu_new(h2)
    h2 = h2 @ params["w_proj"] + params["b_proj"][0]
    return h2 + hs


# ----------------------------------- main -------------------------------------

if __name__ == "__main__":
    key = jax.random.PRNGKey(0)
    ks = jax.random.split(key, 12)

    # ---------- 1) Conv1D (the spec module), standalone ----------
    Bc, Tc, NX, NF = 2, 64, 256, 384            # lane-dense shapes (multiples of 128)
    xc = jax.random.normal(ks[0], (Bc, Tc, NX), jnp.float32)
    wc = 0.02 * jax.random.normal(ks[1], (NX, NF), jnp.float32)
    bc = 0.02 * jax.random.normal(ks[2], (NF,), jnp.float32)
    yc = jax.block_until_ready(conv1d(xc, wc, bc))
    yc_ref = xc @ wc + bc
    assert yc.shape == (Bc, Tc, NF)
    assert jnp.allclose(yc, yc_ref, atol=2e-2, rtol=2e-2), "Conv1D mismatch vs reference"

    # ---------- 2) fused pre-LN transformer block built from Conv1D layers ----------
    B, T, E, H = 2, 128, 256, 2                 # head_dim = 128 (lane-dense)
    I = E                                       # intermediate_size == hidden_size
    x = jax.random.normal(ks[3], (B, T, E), jnp.float32)
    params = {
        "ln1_w": jnp.ones((1, E), jnp.float32), "ln1_b": jnp.zeros((1, E), jnp.float32),
        "ln2_w": jnp.ones((1, E), jnp.float32), "ln2_b": jnp.zeros((1, E), jnp.float32),
        "w_qkv": 0.02 * jax.random.normal(ks[4], (E, 3 * E), jnp.float32),
        "b_qkv": 0.02 * jax.random.normal(ks[5], (1, 3 * E), jnp.float32),
        "w_attn_proj": 0.02 * jax.random.normal(ks[6], (E, E), jnp.float32),
        "b_attn_proj": 0.02 * jax.random.normal(ks[7], (1, E), jnp.float32),
        "w_fc": 0.02 * jax.random.normal(ks[8], (E, I), jnp.float32),
        "b_fc": 0.02 * jax.random.normal(ks[9], (1, I), jnp.float32),
        "w_proj": 0.02 * jax.random.normal(ks[10], (I, E), jnp.float32),
        "b_proj": 0.02 * jax.random.normal(ks[11], (1, E), jnp.float32),
    }
    out = jax.block_until_ready(encoder_block(x, params, num_heads=H, q_tile=64))
    ref = encoder_block_ref(x, params, num_heads=H)
    assert out.shape == (B, T, E)
    # bf16 MXU operands + approx reciprocal -> looser tolerance than the f32 reference
    assert jnp.allclose(out, ref, atol=3e-2, rtol=3e-2), "encoder block mismatch vs reference"

    print("KERNEL_OK")
</pallas_src>

<mosaic_0001>
module attributes {stable_mosaic.version = 11 : i64} {
  func.func @_conv1d_kernel(%arg0: i32, %arg1: memref<128x256xf32, #tpu.memory_space<vmem>>, %arg2: memref<256x384xbf16, #tpu.memory_space<vmem>>, %arg3: memref<1x384xf32, #tpu.memory_space<vmem>>, %arg4: memref<128x384xf32, #tpu.memory_space<vmem>>) attributes {dimension_semantics = [#tpu.dimension_semantics<parallel>], iteration_bounds = array<i64: 1>, scalar_prefetch = 0 : i64, scratch_operands = 0 : i64, tpu.core_type = #tpu.core_type<tc>, window_params = [{transform_indices = @transform_0, window_bounds = array<i64: 128, 256>}, {pipeline_mode = #tpu.pipeline_mode<synchronous>, transform_indices = @transform_1, window_bounds = array<i64: 256, 384>}, {pipeline_mode = #tpu.pipeline_mode<synchronous>, transform_indices = @transform_2, window_bounds = array<i64: 1, 384>}, {transform_indices = @transform_3, window_bounds = array<i64: 128, 384>}]} {
    %c0 = arith.constant 0 : index
    %c0_0 = arith.constant 0 : index
    %0 = vector.load %arg1[%c0, %c0_0] : memref<128x256xf32, #tpu.memory_space<vmem>>, vector<128x256xf32>
    %1 = arith.truncf %0 : vector<128x256xf32> to vector<128x256xbf16>
    %c0_1 = arith.constant 0 : index
    %c0_2 = arith.constant 0 : index
    %2 = vector.load %arg2[%c0_1, %c0_2] : memref<256x384xbf16, #tpu.memory_space<vmem>>, vector<256x384xbf16>
    %cst = arith.constant dense<0.000000e+00> : vector<128x384xf32>
    %3 = tpu.matmul %1, %2, %cst {dimension_numbers = #tpu.dot_dimension_numbers<[1], [0], [0], [1], [0, 0, 1, 1], [], []>} : vector<128x256xbf16>, vector<256x384xbf16>, vector<128x384xf32> -> vector<128x384xf32>
    %c0_3 = arith.constant 0 : index
    %c0_4 = arith.constant 0 : index
    %4 = vector.load %arg3[%c0_3, %c0_4] : memref<1x384xf32, #tpu.memory_space<vmem>>, vector<1x384xf32>
    %5 = vector.shape_cast %4 : vector<1x384xf32> to vector<384xf32>
    %6 = vector.shape_cast %5 : vector<384xf32> to vector<1x384xf32>
    %7 = vector.broadcast %6 : vector<1x384xf32> to vector<128x384xf32>
    %8 = arith.addf %3, %7 : vector<128x384xf32>
    %c0_5 = arith.constant 0 : index
    %c0_6 = arith.constant 0 : index
    %9 = vector.load %arg4[%c0_5, %c0_6] : memref<128x384xf32, #tpu.memory_space<vmem>>, vector<128x384xf32>
    tpu.vector_store %arg4[%c0_5, %c0_6], %8 {strides = array<i32>} : memref<128x384xf32, #tpu.memory_space<vmem>>, vector<128x384xf32>,
    return
  }
  func.func @transform_0(%arg0: i32) -> (i32, i32) {
    %c0_i32 = arith.constant 0 : i32
    %c0_i32_0 = arith.constant 0 : i32
    return %arg0, %c0_i32 : i32, i32
  }
  func.func @transform_1(%arg0: i32) -> (i32, i32) {
    %c0_i32 = arith.constant 0 : i32
    %c0_i32_0 = arith.constant 0 : i32
    %c0_i32_1 = arith.constant 0 : i32
    return %c0_i32, %c0_i32_0 : i32, i32
  }
  func.func @transform_2(%arg0: i32) -> (i32, i32) {
    %c0_i32 = arith.constant 0 : i32
    %c0_i32_0 = arith.constant 0 : i32
    %c0_i32_1 = arith.constant 0 : i32
    return %c0_i32, %c0_i32_0 : i32, i32
  }
  func.func @transform_3(%arg0: i32) -> (i32, i32) {
    %c0_i32 = arith.constant 0 : i32
    %c0_i32_0 = arith.constant 0 : i32
    return %arg0, %c0_i32 : i32, i32
  }
}

</mosaic_0001>

<bundles_post_ra>
// kernel: tpu_custom_call.1
= control target key start
LH: loop header
LB: loop body
LE: loop exit
PB: predicated region body
PF: predicated region fallthrough
CT: control target
= control target key end

     0   :  { %8 = vsyncpa [#allocation3], 0  ;;  %s1084_s0 = inlined_call_operand.hbm [shape: f32[128,256], index: 0, kind: input, shape index: {}]   ;;  %s1085_s1 = inlined_call_operand.hbm [shape: bf16[256,384], index: 1, kind: input, shape index: {}]   ;;  %s1086_s2 = inlined_call_operand.vmem [shape: f32[1,384], index: 2, kind: input, shape index: {}]   ;;  %s1087_s3 = inlined_call_operand.hbm [shape: f32[128,384], index: 3, kind: output, shape index: {}]  }
   0x1   :  { %9 = vsyncpa [#allocation6], 0 }
   0x2   :  { %10 = vsyncpa [#allocation4], 0  ;;  %s962_s12 = smov [#allocation2]   ;;  %s890_s16 = scalar_lea.hbm %s1084_s0, 4096 }
   0x3   :  { %s16_s13 = sshll.u32 %s962_s12, 4  ;;  %p891_p0 = scmp.ne.s32.totalorder %s1084_s0, %s890_s16  ;;  %s17_s13 = int_to_ptr.vmem [resolvable:$true] %s16_s13 }
   0x4   :  { %p894_p1 = scmp.lt.u32.totalorder %s890_s16, %s1084_s0 }
   0x6   :  { %p896_p2 = pnand %p894_p1, %p891_p0 }
   0x8   :  { %899 = shalt.err (!%p896_p2)
}
   0x9   :  { %s900_s21 = scalar_lea.vmem %s17_s13, 4096  ;;  %p905_p4 = scmp.lt.s32.totalorder %s17_s13, %s17_s13 }
   0xa   :  { %p901_p3 = scmp.ne.s32.totalorder %s17_s13, %s900_s21  ;;  %p906_p5 = scmp.lt.s32.totalorder %s900_s21, %s900_s21 }
   0xc   :  { %p907_p6 = por %p906_p5, %p905_p4 }
   0xe   :  { %p908_p7 = pnand %p907_p6, %p901_p3 }
  0x10   :  { %911 = shalt.err (!%p908_p7)
}
  0x11   :  { %s963_s22 = smov 256   ;;  %s964_s23 = smov 16  }
  0x12   :  { %22 = dma.hbm_to_vmem [thread:$0]  %s1084_s0, 4096, %s17_s13, [#allocation3], %s963_s22, %s963_s22, %s964_s23  }
  0x13   :  { %s965_s26 = smov [#allocation5]   ;;  %s912_s30 = scalar_lea.hbm %s1085_s1, 6144 }
  0x14   :  { %s28_s27 = sshll.u32 %s965_s26, 4  ;;  %p913_p8 = scmp.ne.s32.totalorder %s1085_s1, %s912_s30  ;;  %s29_s27 = int_to_ptr.vmem [resolvable:$true] %s28_s27 }
  0x15   :  { %p916_p9 = scmp.lt.u32.totalorder %s912_s30, %s1085_s1 }
  0x17   :  { %p918_p10 = pnand %p916_p9, %p913_p8 }
  0x19   :  { %921 = shalt.err (!%p918_p10)
}
  0x1a   :  { %s922_s8 = scalar_lea.vmem %s29_s27, 6144  ;;  %p927_p12 = scmp.lt.s32.totalorder %s29_s27, %s29_s27 }
  0x1b   :  { %p923_p11 = scmp.ne.s32.totalorder %s29_s27, %s922_s8  ;;  %p928_p13 = scmp.lt.s32.totalorder %s922_s8, %s922_s8 }
  0x1d   :  { %p929_p0 = por %p928_p13, %p927_p12 }
  0x1f   :  { %p930_p1 = pnand %p929_p0, %p923_p11 }
  0x21   :  { %933 = shalt.err (!%p930_p1)
}
  0x22   :  { %s966_s0 = smov 192   ;;  %s967_s9 = smov 12  }
  0x23   :  { %34 = dma.hbm_to_vmem [thread:$0]  %s1085_s1, 6144, %s29_s27, [#allocation6], %s966_s0, %s966_s0, %s967_s9  }
  0x24   :  { %956 = dma.done.wait [#allocation3], 4096  }
  0x25   :  { %957 = vsyncadd [#allocation3], 4294963200 }
  0x26   :  { %958 = dma.done.wait [#allocation6], 6144  }
  0x27   :  { %959 = vsyncadd [#allocation6], 4294961152  ;;  %v826_v0 = vld [vmem:[#allocation5 + $0x4] ss:$12 sps:$4 sm:$0xff]   ;;  %v828_v1 = vld [vmem:[#allocation5] ss:$12 sps:$4 sm:$0xff]  }
  0x28   :  { %429 = vmatprep.subr.bf16.mxu0 %v826_v0  ;;  %v829_v2 = vld [vmem:[#allocation5 + $0x1c] ss:$12 sps:$4 sm:$0xff]   ;;  %v831_v3 = vld [vmem:[#allocation5 + $0x18] ss:$12 sps:$4 sm:$0xff]   ;;  %v832_v4 = vld [vmem:[#allocation5 + $0x34] ss:$12 sps:$4 sm:$0xff]  }
  0x29   :  { %430 = vmatpush1.bf16.msra.mxu0 %v828_v1  ;;  %v834_v5 = vld [vmem:[#allocation5 + $0x30] ss:$12 sps:$4 sm:$0xff]   ;;  %v835_v6 = vld [vmem:[#allocation5 + $0x4c] ss:$12 sps:$4 sm:$0xff]   ;;  %v847_v7 = vld [vmem:[#allocation5 + $0xc8] ss:$12 sps:$4 sm:$0xff]  }
  0x2a   :  { %431 = vmatprep.subr.bf16.mxu0 %v829_v2  ;;  %v837_v8 = vld [vmem:[#allocation5 + $0x48] ss:$12 sps:$4 sm:$0xff]   ;;  %v838_v9 = vld [vmem:[#allocation5 + $0x64] ss:$12 sps:$4 sm:$0xff]   ;;  %753 = vmatprep.subr.bf16.mxu1 %v847_v7  ;;  %v852_v11 = vld [vmem:[#allocation5 + $0xe0] ss:$12 sps:$4 sm:$0xff]  }
  0x2b   :  { %v850_v10 = vld [vmem:[#allocation5 + $0x8] ss:$12 sps:$4 sm:$0xff]   ;;  %v840_v12 = vld [vmem:[#allocation5 + $0x60] ss:$12 sps:$4 sm:$0xff]   ;;  %v857_v15 = vld [vmem:[#allocation5 + $0xf8] ss:$12 sps:$4 sm:$0xff]  }
  0x2c   :  { %754 = vmatpush3.bf16.msra.mxu1 %v850_v10  ;;  %v841_v13 = vld [vmem:[#allocation5 + $0x7c] ss:$12 sps:$4 sm:$0xff]   ;;  %v855_v14 = vld [vmem:[#allocation5 + $0x20] ss:$12 sps:$4 sm:$0xff]   ;;  %v843_v16 = vld [vmem:[#allocation5 + $0x78] ss:$12 sps:$4 sm:$0xff]  }
  0x2d   :  { %432 = vmatpush1.bf16.msra.mxu0 %v831_v3  ;;  %755 = vmatprep.subr.bf16.mxu1 %v852_v11  ;;  %v860_v17 = vld [vmem:[#allocation5 + $0x38] ss:$12 sps:$4 sm:$0xff]   ;;  %v844_v18 = vld [vmem:[#allocation5 + $0x94] ss:$12 sps:$4 sm:$0xff]   ;;  %v862_v19 = vld [vmem:[#allocation5 + $0x110] ss:$12 sps:$4 sm:$0xff]  }
  0x2e   :  { %433 = vmatprep.subr.bf16.mxu0 %v832_v4  ;;  %v846_v20 = vld [vmem:[#allocation5 + $0x90] ss:$12 sps:$4 sm:$0xff]   ;;  %v867_v22 = vld [vmem:[#allocation5 + $0x128] ss:$12 sps:$4 sm:$0xff]   ;;  %v848_v23 = vld [vmem:[#allocation5 + $0xac] ss:$12 sps:$4 sm:$0xff]  }
  0x2f   :  { %v865_v21 = vld [vmem:[#allocation5 + $0x50] ss:$12 sps:$4 sm:$0xff]   ;;  %v851_v24 = vld [vmem:[#allocation5 + $0xa8] ss:$12 sps:$4 sm:$0xff]   ;;  %v872_v26 = vld [vmem:[#allocation5 + $0x140] ss:$12 sps:$4 sm:$0xff]  }
  0x30   :  { %756 = vmatpush3.bf16.msra.mxu1 %v855_v14  ;;  %v870_v25 = vld [vmem:[#allocation5 + $0x68] ss:$12 sps:$4 sm:$0xff]   ;;  %v853_v27 = vld [vmem:[#allocation5 + $0xc4] ss:$12 sps:$4 sm:$0xff]   ;;  %v856_v28 = vld [vmem:[#allocation5 + $0xc0] ss:$12 sps:$4 sm:$0xff]  }
  0x31   :  { %434 = vmatpush1.bf16.msra.mxu0 %v834_v5  ;;  %757 = vmatprep.subr.bf16.mxu1 %v857_v15  ;;  %v875_v29 = vld [vmem:[#allocation5 + $0x80] ss:$12 sps:$4 sm:$0xff]   ;;  %v877_v30 = vld [vmem:[#allocation5 + $0x158] ss:$12 sps:$4 sm:$0xff]   ;;  %v858_v31 = vld [vmem:[#allocation5 + $0xdc] ss:$12 sps:$4 sm:$0xff]  }
  0x32   :  { %435 = vmatprep.subr.bf16.mxu0 %v835_v6  ;;  %v880_v32 = vld [vmem:[#allocation5 + $0x98] ss:$12 sps:$4 sm:$0xff]   ;;  %v882_v34 = vld [vmem:[#allocation5 + $0x170] ss:$12 sps:$4 sm:$0xff]   ;;  %v863_v35 = vld [vmem:[#allocation5 + $0xf4] ss:$12 sps:$4 sm:$0xff]  }
  0x33   :  { %v861_v33 = vld [vmem:[#allocation5 + $0xd8] ss:$12 sps:$4 sm:$0xff]   ;;  %v45_v36 = vld [vmem:[#allocation2 + $0x8] sm:$0xff]  ;;  %v885_v39 = vld [vmem:[#allocation5 + $0xb0] ss:$12 sps:$4 sm:$0xff]  }
  0x34   :  { %758 = vmatpush3.bf16.msra.mxu1 %v860_v17  ;;  %v47_v37 = vld [vmem:[#allocation2 + $0x18] sm:$0xff]  ;;  %v44_v40 = vld [vmem:[#allocation2] sm:$0xff]  ;;  %v46_v41 = vld [vmem:[#allocation2 + $0x10] sm:$0xff] }
  0x35   :  { %436 = vmatpush1.bf16.msra.mxu0 %v837_v8  ;;  %759 = vmatprep.subr.bf16.mxu1 %v862_v19  ;;  %v77_v38 = vpack.c.bf16 %v47_v37, %v45_v36  ;;  %v866_v42 = vld [vmem:[#allocation5 + $0xf0] ss:$12 sps:$4 sm:$0xff]   ;;  %v49_v43 = vld [vmem:[#allocation2 + $0x28] sm:$0xff]  ;;  %v76_v46 = vpack.c.bf16 %v46_v41, %v44_v40  ;;  %v48_v50 = vld [vmem:[#allocation2 + $0x20] sm:$0xff] }
  0x36   :  { %437 = vmatprep.subr.bf16.mxu0 %v838_v9  ;;  %v51_v44 = vld [vmem:[#allocation2 + $0x38] sm:$0xff]  ;;  %v871_v48 = vld [vmem:[#allocation5 + $0x108] ss:$12 sps:$4 sm:$0xff]   ;;  %v873_v49 = vld [vmem:[#allocation5 + $0x124] ss:$12 sps:$4 sm:$0xff]  }
  0x37   :  { %v868_v45 = vld [vmem:[#allocation5 + $0x10c] ss:$12 sps:$4 sm:$0xff]   ;;  %574 = vmatprep.mubr.bf16.mxu1 %v77_v38  ;;  %461 = vmatprep.mubr.bf16.mxu0 %v77_v38  ;;  %v79_v47 = vpack.c.bf16 %v51_v44, %v49_v43  ;;  %v50_v51 = vld [vmem:[#allocation2 + $0x30] sm:$0xff]  ;;  %v878_v55 = vld [vmem:[#allocation5 + $0x13c] ss:$12 sps:$4 sm:$0xff]  }
  0x38   :  { %760 = vmatpush3.bf16.msra.mxu1 %v865_v21  ;;  %v876_v52 = vld [vmem:[#allocation5 + $0x120] ss:$12 sps:$4 sm:$0xff]   ;;  %v55_v54 = vld [vmem:[#allocation2 + $0x58] sm:$0xff]  ;;  %v78_v56 = vpack.c.bf16 %v50_v51, %v48_v50  ;;  %v54_v61 = vld [vmem:[#allocation2 + $0x50] sm:$0xff] }
  0x39   :  { %438 = vmatpush1.bf16.msra.mxu0 %v840_v12  ;;  %761 = vmatprep.subr.bf16.mxu1 %v867_v22  ;;  %v53_v53 = vld [vmem:[#allocation2 + $0x48] sm:$0xff]  ;;  %v881_v58 = vld [vmem:[#allocation5 + $0x138] ss:$12 sps:$4 sm:$0xff]   ;;  %v883_v59 = vld [vmem:[#allocation5 + $0x154] ss:$12 sps:$4 sm:$0xff]  }
  0x3a   :  { %439 = vmatprep.subr.bf16.mxu0 %v841_v13  ;;  %v81_v57 = vpack.c.bf16 %v55_v54, %v53_v53  ;;  %v52_v60 = vld [vmem:[#allocation2 + $0x40] sm:$0xff]  ;;  %v886_v62 = vld [vmem:[#allocation5 + $0x150] ss:$12 sps:$4 sm:$0xff]   ;;  %v57_v63 = vld [vmem:[#allocation2 + $0x68] sm:$0xff] }
  0x3b   :  { %v59_v0 = vld [vmem:[#allocation2 + $0x78] sm:$0xff]  ;;  %v80_v2 = vpack.c.bf16 %v54_v61, %v52_v60  ;;  %v889_v4 = vld [vmem:[#allocation5 + $0x168] ss:$12 sps:$4 sm:$0xff]   ;;  %v56_v5 = vld [vmem:[#allocation2 + $0x60] sm:$0xff] }
  0x3c   :  { %762 = vmatpush3.bf16.msra.mxu1 %v870_v25  ;;  %v887_v1 = vld [vmem:[#allocation5 + $0x16c] ss:$12 sps:$4 sm:$0xff]   ;;  %v83_v3 = vpack.c.bf16 %v59_v0, %v57_v63  ;;  %v58_v6 = vld [vmem:[#allocation2 + $0x70] sm:$0xff]  ;;  %v60_v11 = vld [vmem:[#allocation2 + $0x80] sm:$0xff] }
  0x3d   :  { %440 = vmatpush1.bf16.msra.mxu0 %v843_v16  ;;  %763 = vmatprep.subr.bf16.mxu1 %v872_v26  ;;  %v61_v7 = vld [vmem:[#allocation2 + $0x88] sm:$0xff]  ;;  %v63_v8 = vld [vmem:[#allocation2 + $0x98] sm:$0xff]  ;;  %v82_v9 = vpack.c.bf16 %v58_v6, %v56_v5  ;;  %v62_v12 = vld [vmem:[#allocation2 + $0x90] sm:$0xff] }
  0x3e   :  { %441 = vmatprep.subr.bf16.mxu0 %v844_v18  ;;  %v85_v10 = vpack.c.bf16 %v63_v8, %v61_v7  ;;  %v65_v13 = vld [vmem:[#allocation2 + $0xa8] sm:$0xff]  ;;  %v67_v14 = vld [vmem:[#allocation2 + $0xb8] sm:$0xff]  ;;  %v84_v15 = vpack.c.bf16 %v62_v12, %v60_v11  ;;  %v64_v17 = vld [vmem:[#allocation2 + $0xa0] sm:$0xff] }
  0x3f   :  { %v87_v16 = vpack.c.bf16 %v67_v14, %v65_v13  ;;  %v66_v18 = vld [vmem:[#allocation2 + $0xb0] sm:$0xff]  ;;  %v69_v19 = vld [vmem:[#allocation2 + $0xc8] sm:$0xff]  ;;  %v75_v26 = vld [vmem:[#allocation2 + $0xf8] sm:$0xff] }
  0x40   :  { %764 = vmatpush3.bf16.msra.mxu1 %v875_v29  ;;  %v86_v21 = vpack.c.bf16 %v66_v18, %v64_v17  ;;  %v73_v25 = vld [vmem:[#allocation2 + $0xe8] sm:$0xff]  ;;  %v72_v29 = vld [vmem:[#allocation2 + $0xe0] sm:$0xff] }
  0x41   :  { %442 = vmatpush1.bf16.msra.mxu0 %v846_v20  ;;  %765 = vmatprep.subr.bf16.mxu1 %v877_v30  ;;  %v71_v20 = vld [vmem:[#allocation2 + $0xd8] sm:$0xff]  ;;  %v74_v30 = vld [vmem:[#allocation2 + $0xf0] sm:$0xff] }
  0x42   :  { %443 = vmatprep.subr.bf16.mxu0 %v848_v23  ;;  %v89_v22 = vpack.c.bf16 %v71_v20, %v69_v19  ;;  %v68_v23 = vld [vmem:[#allocation2 + $0xc0] sm:$0xff] }
  0x44   :  { %766 = vmatpush3.bf16.msra.mxu1 %v880_v32  ;;  %v158_v32 = vlaneseq }
  0x45   :  { %444 = vmatpush1.bf16.msra.mxu0 %v851_v24  ;;  %767 = vmatprep.subr.bf16.mxu1 %v882_v34  ;;  %v70_v24 = vld [vmem:[#allocation2 + $0xd0] sm:$0xff] }
  0x46   :  { %445 = vmatprep.subr.bf16.mxu0 %v853_v27  ;;  %v88_v27 = vpack.c.bf16 %v70_v24, %v68_v23 }
  0x48   :  { %768 = vmatpush3.bf16.msra.mxu1 %v885_v39 }
  0x49   :  { %446 = vmatpush1.bf16.msra.mxu0 %v856_v28  ;;  %v91_v28 = vpack.c.bf16 %v75_v26, %v73_v25 }
  0x4a   :  { %447 = vmatprep.subr.bf16.mxu0 %v858_v31  ;;  %v90_v31 = vpack.c.bf16 %v74_v30, %v72_v29 }
  0x4b   :  { %575 = vmatmul.mubr.bf16.vlgmr.msra.gmra.mrb[0].mxu1 %v76_v46 }
  0x4c   :  { %582 = vmatprep.mubr.bf16.mxu1 %v79_v47 }
  0x4d   :  { %448 = vmatpush1.bf16.msra.mxu0 %v861_v33  ;;  %v159_v33 = vshrl.u32 %v158_v32, 7 }
  0x4e   :  { %449 = vmatprep.subr.bf16.mxu0 %v863_v35  ;;  %v156_v35 = vld [vmem:[%s1086_s2] sm:$0x7]  ;;  %s968_s2 = smov [#allocation7]  }
  0x4f   :  { %v168_v34 = vsub.s32 2, %v159_v33  ;;  %v164_v54 = vsub.s32 1, %v159_v33  ;;  %s692_s13 = sshll.u32 %s968_s2, 4  ;;  %s693_s13 = int_to_ptr.vmem [resolvable:$true] %s692_s13 }
  0x50   :  { %s934_s14 = scalar_lea.vmem %s693_s13, 6144  ;;  %p939_p3 = scmp.lt.s32.totalorder %s693_s13, %s693_s13 }
  0x51   :  { %450 = vmatpush1.bf16.msra.mxu0 %v866_v42  ;;  %v1018_v37 = vrot.slane %v156_v35, %v168_v34  ;;  %v1026_v60 = vrot.slane %v156_v35, %v164_v54  ;;  %p935_p2 = scmp.ne.s32.totalorder %s693_s13, %s934_s14  ;;  %p940_p4 = scmp.lt.s32.totalorder %s934_s14, %s934_s14 }
  0x52   :  { %451 = vmatprep.subr.bf16.mxu0 %v868_v45 }
  0x53   :  { %583 = vmatmul.mubr.bf16.gmra.mrb[4].mxu1 %v78_v56  ;;  %p941_p5 = por %p940_p4, %p939_p3 }
  0x54   :  { %590 = vmatprep.mubr.bf16.mxu1 %v81_v57 }
  0x55   :  { %452 = vmatpush1.bf16.msra.mxu0 %v871_v48  ;;  %p942_p6 = pnand %p941_p5, %p935_p2 }
  0x56   :  { %453 = vmatprep.subr.bf16.mxu0 %v873_v49 }
  0x59   :  { %454 = vmatpush1.bf16.msra.mxu0 %v876_v52  ;;  %v160_v52 = vsub.s32 0, %v159_v33 }
  0x5a   :  { %455 = vmatprep.subr.bf16.mxu0 %v878_v55 }
  0x5b   :  { %591 = vmatmul.mubr.bf16.gmra.mrb[8].mxu1 %v80_v2 }
  0x5c   :  { %598 = vmatprep.mubr.bf16.mxu1 %v83_v3 }
  0x5d   :  { %456 = vmatpush1.bf16.msra.mxu0 %v881_v58 }
  0x5e   :  { %457 = vmatprep.subr.bf16.mxu0 %v883_v59 }
  0x61   :  { %458 = vmatpush1.bf16.msra.mxu0 %v886_v62 }
  0x62   :  { %459 = vmatprep.subr.bf16.mxu0 %v887_v1 }
  0x63   :  { %599 = vmatmul.mubr.bf16.gmra.mrb[12].mxu1 %v82_v9 }
  0x64   :  { %606 = vmatprep.mubr.bf16.mxu1 %v85_v10 }
  0x65   :  { %460 = vmatpush1.bf16.msra.mxu0 %v889_v4 }
  0x68   :  { %462 = vmatmul.mubr.bf16.vlgmr.msra.gmra.mrb[0].mxu0 %v76_v46 }
  0x69   :  { %471 = vmatprep.mubr.bf16.mxu0 %v79_v47 }
  0x6b   :  { %607 = vmatmul.mubr.bf16.gmra.mrb[16].mxu1 %v84_v15 }
  0x6c   :  { %614 = vmatprep.mubr.bf16.mxu1 %v87_v16 }
  0x70   :  { %472 = vmatmul.mubr.bf16.gmra.mrb[4].mxu0 %v78_v56 }
  0x71   :  { %481 = vmatprep.mubr.bf16.mxu0 %v81_v57  ;;  %v1024_v57 = vrot.slane %v156_v35, %v160_v52 }
  0x73   :  { %615 = vmatmul.mubr.bf16.gmra.mrb[20].mxu1 %v86_v21 }
  0x74   :  { %622 = vmatprep.mubr.bf16.mxu1 %v89_v22 }
  0x78   :  { %482 = vmatmul.mubr.bf16.gmra.mrb[8].mxu0 %v80_v2 }
  0x79   :  { %491 = vmatprep.mubr.bf16.mxu0 %v83_v3 }
  0x7b   :  { %623 = vmatmul.mubr.bf16.gmra.mrb[24].mxu1 %v88_v27 }
  0x7c   :  { %630 = vmatprep.mubr.bf16.mxu1 %v91_v28 }
  0x80   :  { %492 = vmatmul.mubr.bf16.gmra.mrb[12].mxu0 %v82_v9 }
  0x81   :  { %501 = vmatprep.mubr.bf16.mxu0 %v85_v10 }
  0x83   :  { %631 = vmatmul.mubr.bf16.gmra.mrb[28].mxu1 %v90_v31 }
  0x88   :  { %502 = vmatmul.mubr.bf16.gmra.mrb[16].mxu0 %v84_v15 }
  0x89   :  { %511 = vmatprep.mubr.bf16.mxu0 %v87_v16 }
  0x90   :  { %512 = vmatmul.mubr.bf16.gmra.mrb[20].mxu0 %v86_v21 }
  0x91   :  { %521 = vmatprep.mubr.bf16.mxu0 %v89_v22 }
  0x98   :  { %522 = vmatmul.mubr.bf16.gmra.mrb[24].mxu0 %v88_v27 }
  0x99   :  { %531 = vmatprep.mubr.bf16.mxu0 %v91_v28 }
  0xa0   :  { %532 = vmatmul.mubr.bf16.gmra.mrb[28].mxu0 %v90_v31 }
 0x11e   :  { %v769_v36 = vpop.f32.mrb[0].mxu1 }
 0x11f   :  { %v770_v38 = vpop.f32.mrb[1].mxu1 }
 0x120   :  { %v771_v39 = vadd.f32 %v770_v38, %v769_v36  ;;  %v772_v40 = vpop.f32.mrb[2].mxu1 }
 0x121   :  { %v773_v41 = vpop.f32.mrb[3].mxu1 }
 0x122   :  { %v577_v42 = vadd.f32 %v771_v39, %v1018_v37  ;;  %v774_v43 = vadd.f32 %v773_v41, %v772_v40 }
 0x124   :  { %641 = vst [vmem:[#allocation7 + $0x10] sm:$0xff] %v577_v42  ;;  %v580_v44 = vadd.f32 %v774_v43, %v1018_v37 }
 0x126   :  { %644 = vst [vmem:[#allocation7 + $0x28] sm:$0xff] %v580_v44  ;;  %v775_v45 = vpop.f32.mrb[4].mxu1 }
 0x127   :  { %v776_v46 = vpop.f32.mrb[5].mxu1 }
 0x128   :  { %v777_v47 = vadd.f32 %v776_v46, %v775_v45  ;;  %v778_v48 = vpop.f32.mrb[6].mxu1 }
 0x129   :  { %v779_v49 = vpop.f32.mrb[7].mxu1 }
 0x12a   :  { %v585_v50 = vadd.f32 %v777_v47, %v1018_v37  ;;  %v780_v51 = vadd.f32 %v779_v49, %v778_v48 }
 0x12c   :  { %647 = vst [vmem:[#allocation7 + $0x40] sm:$0xff] %v585_v50  ;;  %v588_v53 = vadd.f32 %v780_v51, %v1018_v37 }
 0x12e   :  { %650 = vst [vmem:[#allocation7 + $0x58] sm:$0xff] %v588_v53  ;;  %v781_v55 = vpop.f32.mrb[8].mxu1 }
 0x12f   :  { %v782_v56 = vpop.f32.mrb[9].mxu1 }
 0x130   :  { %v783_v58 = vadd.f32 %v782_v56, %v781_v55  ;;  %v784_v59 = vpop.f32.mrb[10].mxu1 }
 0x131   :  { %v785_v61 = vpop.f32.mrb[11].mxu1 }
 0x132   :  { %v593_v62 = vadd.f32 %v783_v58, %v1018_v37  ;;  %v786_v63 = vadd.f32 %v785_v61, %v784_v59 }
 0x134   :  { %653 = vst [vmem:[#allocation7 + $0x70] sm:$0xff] %v593_v62  ;;  %v596_v3 = vadd.f32 %v786_v63, %v1018_v37 }
 0x136   :  { %656 = vst [vmem:[#allocation7 + $0x88] sm:$0xff] %v596_v3  ;;  %v787_v8 = vpop.f32.mrb[12].mxu1 }
 0x137   :  { %v788_v10 = vpop.f32.mrb[13].mxu1 }
 0x138   :  { %v789_v11 = vadd.f32 %v788_v10, %v787_v8  ;;  %v790_v12 = vpop.f32.mrb[14].mxu1 }
 0x139   :  { %v791_v13 = vpop.f32.mrb[15].mxu1 }
 0x13a   :  { %v601_v14 = vadd.f32 %v789_v11, %v1018_v37  ;;  %v792_v15 = vadd.f32 %v791_v13, %v790_v12 }
 0x13b   :  { %v463_v0 = vpop.f32.mrb[0].mxu0 }
 0x13c   :  { %v464_v1 = vadd.f32 %v463_v0, %v1024_v57  ;;  %v465_v2 = vpop.f32.mrb[1].mxu0  ;;  %659 = vst [vmem:[#allocation7 + $0xa0] sm:$0xff] %v601_v14  ;;  %v604_v19 = vadd.f32 %v792_v15, %v1018_v37 }
 0x13d   :  { %v466_v4 = vadd.f32 %v465_v2, %v1026_v60  ;;  %v467_v5 = vpop.f32.mrb[2].mxu0 }
 0x13e   :  { %639 = vst [vmem:[#allocation7] sm:$0xff] %v464_v1  ;;  %v468_v6 = vadd.f32 %v467_v5, %v1024_v57  ;;  %v469_v7 = vpop.f32.mrb[3].mxu0  ;;  %662 = vst [vmem:[#allocation7 + $0xb8] sm:$0xff] %v604_v19  ;;  %v793_v24 = vpop.f32.mrb[16].mxu1 }
 0x13f   :  { %640 = vst [vmem:[#allocation7 + $0x8] sm:$0xff] %v466_v4  ;;  %v470_v9 = vadd.f32 %v469_v7, %v1026_v60  ;;  %v794_v26 = vpop.f32.mrb[17].mxu1 }
 0x140   :  { %642 = vst [vmem:[#allocation7 + $0x18] sm:$0xff] %v468_v6  ;;  %v795_v27 = vadd.f32 %v794_v26, %v793_v24  ;;  %v796_v28 = vpop.f32.mrb[18].mxu1 }
 0x141   :  { %643 = vst [vmem:[#allocation7 + $0x20] sm:$0xff] %v470_v9  ;;  %v797_v29 = vpop.f32.mrb[19].mxu1 }
 0x142   :  { %v609_v30 = vadd.f32 %v795_v27, %v1018_v37  ;;  %v798_v31 = vadd.f32 %v797_v29, %v796_v28 }
 0x143   :  { %v473_v16 = vpop.f32.mrb[4].mxu0 }
 0x144   :  { %v474_v17 = vadd.f32 %v473_v16, %v1024_v57  ;;  %v475_v18 = vpop.f32.mrb[5].mxu0  ;;  %665 = vst [vmem:[#allocation7 + $0xd0] sm:$0xff] %v609_v30  ;;  %v612_v35 = vadd.f32 %v798_v31, %v1018_v37 }
 0x145   :  { %v476_v20 = vadd.f32 %v475_v18, %v1026_v60  ;;  %v477_v21 = vpop.f32.mrb[6].mxu0 }
 0x146   :  { %645 = vst [vmem:[#allocation7 + $0x30] sm:$0xff] %v474_v17  ;;  %v478_v22 = vadd.f32 %v477_v21, %v1024_v57  ;;  %v479_v23 = vpop.f32.mrb[7].mxu0  ;;  %668 = vst [vmem:[#allocation7 + $0xe8] sm:$0xff] %v612_v35  ;;  %v799_v41 = vpop.f32.mrb[20].mxu1 }
 0x147   :  { %646 = vst [vmem:[#allocation7 + $0x38] sm:$0xff] %v476_v20  ;;  %v480_v25 = vadd.f32 %v479_v23, %v1026_v60  ;;  %v800_v43 = vpop.f32.mrb[21].mxu1 }
 0x148   :  { %648 = vst [vmem:[#allocation7 + $0x48] sm:$0xff] %v478_v22  ;;  %v801_v44 = vadd.f32 %v800_v43, %v799_v41  ;;  %v802_v45 = vpop.f32.mrb[22].mxu1 }
 0x149   :  { %649 = vst [vmem:[#allocation7 + $0x50] sm:$0xff] %v480_v25  ;;  %v803_v46 = vpop.f32.mrb[23].mxu1 }
 0x14a   :  { %v617_v47 = vadd.f32 %v801_v44, %v1018_v37  ;;  %v804_v48 = vadd.f32 %v803_v46, %v802_v45 }
 0x14b   :  { %v483_v32 = vpop.f32.mrb[8].mxu0 }
 0x14c   :  { %v484_v33 = vadd.f32 %v483_v32, %v1024_v57  ;;  %v485_v34 = vpop.f32.mrb[9].mxu0  ;;  %671 = vst [vmem:[#allocation7 + $0x100] sm:$0xff] %v617_v47  ;;  %v620_v52 = vadd.f32 %v804_v48, %v1018_v37 }
 0x14d   :  { %v486_v36 = vadd.f32 %v485_v34, %v1026_v60  ;;  %v487_v38 = vpop.f32.mrb[10].mxu0 }
 0x14e   :  { %651 = vst [vmem:[#allocation7 + $0x60] sm:$0xff] %v484_v33  ;;  %v488_v39 = vadd.f32 %v487_v38, %v1024_v57  ;;  %v489_v40 = vpop.f32.mrb[11].mxu0  ;;  %674 = vst [vmem:[#allocation7 + $0x118] sm:$0xff] %v620_v52  ;;  %v805_v58 = vpop.f32.mrb[24].mxu1 }
 0x14f   :  { %652 = vst [vmem:[#allocation7 + $0x68] sm:$0xff] %v486_v36  ;;  %v490_v42 = vadd.f32 %v489_v40, %v1026_v60  ;;  %v806_v61 = vpop.f32.mrb[25].mxu1 }
 0x150   :  { %654 = vst [vmem:[#allocation7 + $0x78] sm:$0xff] %v488_v39  ;;  %v807_v62 = vadd.f32 %v806_v61, %v805_v58  ;;  %v808_v63 = vpop.f32.mrb[26].mxu1 }
 0x151   :  { %655 = vst [vmem:[#allocation7 + $0x80] sm:$0xff] %v490_v42  ;;  %v809_v0 = vpop.f32.mrb[27].mxu1 }
 0x152   :  { %v625_v1 = vadd.f32 %v807_v62, %v1018_v37  ;;  %v810_v2 = vadd.f32 %v809_v0, %v808_v63 }
 0x153   :  { %v493_v49 = vpop.f32.mrb[12].mxu0 }
 0x154   :  { %v494_v50 = vadd.f32 %v493_v49, %v1024_v57  ;;  %v495_v51 = vpop.f32.mrb[13].mxu0  ;;  %677 = vst [vmem:[#allocation7 + $0x130] sm:$0xff] %v625_v1  ;;  %v628_v6 = vadd.f32 %v810_v2, %v1018_v37 }
 0x155   :  { %v496_v53 = vadd.f32 %v495_v51, %v1026_v60  ;;  %v497_v54 = vpop.f32.mrb[14].mxu0 }
 0x156   :  { %657 = vst [vmem:[#allocation7 + $0x90] sm:$0xff] %v494_v50  ;;  %v498_v55 = vadd.f32 %v497_v54, %v1024_v57  ;;  %v499_v56 = vpop.f32.mrb[15].mxu0  ;;  %680 = vst [vmem:[#allocation7 + $0x148] sm:$0xff] %v628_v6  ;;  %v811_v11 = vpop.f32.mrb[28].mxu1 }
 0x157   :  { %658 = vst [vmem:[#allocation7 + $0x98] sm:$0xff] %v496_v53  ;;  %v500_v59 = vadd.f32 %v499_v56, %v1026_v60  ;;  %v812_v13 = vpop.f32.mrb[29].mxu1 }
 0x158   :  { %660 = vst [vmem:[#allocation7 + $0xa8] sm:$0xff] %v498_v55  ;;  %v813_v14 = vadd.f32 %v812_v13, %v811_v11  ;;  %v814_v15 = vpop.f32.mrb[30].mxu1 }
 0x159   :  { %661 = vst [vmem:[#allocation7 + $0xb0] sm:$0xff] %v500_v59  ;;  %v815_v16 = vpop.f32.mrb[31].mxu1 }
 0x15a   :  { %v633_v17 = vadd.f32 %v813_v14, %v1018_v37  ;;  %v816_v18 = vadd.f32 %v815_v16, %v814_v15 }
 0x15b   :  { %v503_v3 = vpop.f32.mrb[16].mxu0 }
 0x15c   :  { %v504_v4 = vadd.f32 %v503_v3, %v1024_v57  ;;  %v505_v5 = vpop.f32.mrb[17].mxu0  ;;  %683 = vst [vmem:[#allocation7 + $0x160] sm:$0xff] %v633_v17  ;;  %v636_v22 = vadd.f32 %v816_v18, %v1018_v37 }
 0x15d   :  { %v506_v7 = vadd.f32 %v505_v5, %v1026_v60  ;;  %v507_v8 = vpop.f32.mrb[18].mxu0 }
 0x15e   :  { %663 = vst [vmem:[#allocation7 + $0xc0] sm:$0xff] %v504_v4  ;;  %v508_v9 = vadd.f32 %v507_v8, %v1024_v57  ;;  %v509_v10 = vpop.f32.mrb[19].mxu0  ;;  %686 = vst [vmem:[#allocation7 + $0x178] sm:$0xff] %v636_v22 }
 0x15f   :  { %664 = vst [vmem:[#allocation7 + $0xc8] sm:$0xff] %v506_v7  ;;  %v510_v12 = vadd.f32 %v509_v10, %v1026_v60 }
 0x160   :  { %666 = vst [vmem:[#allocation7 + $0xd8] sm:$0xff] %v508_v9 }
 0x161   :  { %667 = vst [vmem:[#allocation7 + $0xe0] sm:$0xff] %v510_v12 }
 0x163   :  { %v513_v19 = vpop.f32.mrb[20].mxu0 }
 0x164   :  { %v514_v20 = vadd.f32 %v513_v19, %v1024_v57  ;;  %v515_v21 = vpop.f32.mrb[21].mxu0 }
 0x165   :  { %v516_v23 = vadd.f32 %v515_v21, %v1026_v60  ;;  %v517_v24 = vpop.f32.mrb[22].mxu0 }
 0x166   :  { %669 = vst [vmem:[#allocation7 + $0xf0] sm:$0xff] %v514_v20  ;;  %v518_v25 = vadd.f32 %v517_v24, %v1024_v57  ;;  %v519_v26 = vpop.f32.mrb[23].mxu0 }
 0x167   :  { %670 = vst [vmem:[#allocation7 + $0xf8] sm:$0xff] %v516_v23  ;;  %v520_v27 = vadd.f32 %v519_v26, %v1026_v60 }
 0x168   :  { %672 = vst [vmem:[#allocation7 + $0x108] sm:$0xff] %v518_v25 }
 0x169   :  { %673 = vst [vmem:[#allocation7 + $0x110] sm:$0xff] %v520_v27 }
 0x16b   :  { %v523_v28 = vpop.f32.mrb[24].mxu0 }
 0x16c   :  { %v524_v29 = vadd.f32 %v523_v28, %v1024_v57  ;;  %v525_v30 = vpop.f32.mrb[25].mxu0 }
 0x16d   :  { %v526_v31 = vadd.f32 %v525_v30, %v1026_v60  ;;  %v527_v37 = vpop.f32.mrb[26].mxu0 }
 0x16e   :  { %675 = vst [vmem:[#allocation7 + $0x120] sm:$0xff] %v524_v29  ;;  %v528_v32 = vadd.f32 %v527_v37, %v1024_v57  ;;  %v529_v33 = vpop.f32.mrb[27].mxu0 }
 0x16f   :  { %676 = vst [vmem:[#allocation7 + $0x128] sm:$0xff] %v526_v31  ;;  %v530_v34 = vadd.f32 %v529_v33, %v1026_v60 }
 0x170   :  { %678 = vst [vmem:[#allocation7 + $0x138] sm:$0xff] %v528_v32 }
 0x171   :  { %679 = vst [vmem:[#allocation7 + $0x140] sm:$0xff] %v530_v34 }
 0x173   :  { %v533_v35 = vpop.f32.mrb[28].mxu0 }
 0x174   :  { %v534_v36 = vadd.f32 %v533_v35, %v1024_v57  ;;  %v535_v38 = vpop.f32.mrb[29].mxu0 }
 0x175   :  { %v536_v39 = vadd.f32 %v535_v38, %v1026_v60  ;;  %v537_v40 = vpop.f32.mrb[30].mxu0 }
 0x176   :  { %681 = vst [vmem:[#allocation7 + $0x150] sm:$0xff] %v534_v36  ;;  %v538_v41 = vadd.f32 %v537_v40, %v1024_v57  ;;  %v539_v42 = vpop.f32.mrb[31].mxu0 }
 0x177   :  { %682 = vst [vmem:[#allocation7 + $0x158] sm:$0xff] %v536_v39  ;;  %v540_v43 = vadd.f32 %v539_v42, %v1026_v60 }
 0x178   :  { %684 = vst [vmem:[#allocation7 + $0x168] sm:$0xff] %v538_v41 }
 0x179   :  { %685 = vst [vmem:[#allocation7 + $0x170] sm:$0xff] %v540_v43 }
 0x17a   :  { %945 = shalt.err (!%p942_p6)
}
 0x17b   :  { %s946_s17 = scalar_lea.hbm %s1087_s3, 6144 }
 0x17c   :  { %p947_p7 = scmp.ne.s32.totalorder %s1087_s3, %s946_s17  ;;  %p950_p8 = scmp.lt.u32.totalorder %s946_s17, %s1087_s3 }
 0x17e   :  { %p952_p9 = pnand %p950_p8, %p947_p7 }
 0x180   :  { %955 = shalt.err (!%p952_p9)
}
 0x181   :  { %s969_s22 = smov 384   ;;  %s970_s23 = smov 24  }
 0x182   :  { %698 = dma.vmem_to_hbm [thread:$0]  %s693_s13, 6144, %s1087_s3, [#allocation4], %s969_s22, %s969_s22, %s970_s23  }
 0x183   :  { %960 = dma.done.wait [#allocation4], 6144  }
 0x184   :  { %961 = vsyncadd [#allocation4], 4294961152 }
 0x185   :  { %702 = vsyncpa [#allocation3], 1 }
 0x186   :  { %703 = vsyncpa [#allocation6], 1 }
 0x187   :  { %704 = vsyncpa [#allocation4], 1 }

</bundles_post_ra>
